<compile_context>
chip_gen: v5e
topology: v5e:2x2
jax: 0.10.0
libtpu: 0.0.40
codegen_flags: <defaults>
</compile_context>

<pallas_src>
import functools
import math

import jax
import jax.numpy as jnp
from jax import lax
from jax.experimental import pallas as pl
from jax.experimental.pallas import tpu as pltpu


# -----------------------------------------------------------------------------
# loss_parse: identical semantics to the PyTorch helper
# -----------------------------------------------------------------------------
def loss_parse(loss_str):
    ratios = []
    losses = []
    for item in loss_str.split("|"):
        sub = item.split("*")
        ratios.append(float(sub[0]))
        losses.append(sub[1])
    return ratios, losses


# -----------------------------------------------------------------------------
# Shared Pallas reduction: one pass over (x, y) producing per-lane partial sums
# of (x-y)^2 and |x-y|.
# -----------------------------------------------------------------------------
_LANES = 128
_MAX_TILE_ROWS = 2048   # 2048 * 128 * 4 B = 1 MiB f32 per input block
_NUM_PARTS = 2          # leading "parallel" grid axis (2 TCs on v7x)


def _round_up(a, b):
    return (a + b - 1) // b * b


def _reduce_kernel(x_ref, y_ref, sq_ref, abs_ref, *,
                   tile_rows, rows, steps_per_part, needs_mask):
    part = pl.program_id(0)
    step = pl.program_id(1)

    # Output blocks are revisited across the (arbitrary) step axis: init once.
    @pl.when(step == 0)
    def _init():
        sq_ref[...] = jnp.zeros_like(sq_ref)
        abs_ref[...] = jnp.zeros_like(abs_ref)

    d = x_ref[...].astype(jnp.float32) - y_ref[...].astype(jnp.float32)

    if needs_mask:
        # Mask rows beyond the valid range (partial last block and/or blocks
        # that belong to a part whose work ran out; those are clamped to the
        # last valid block by the index_map and fully masked here).
        blk = part * steps_per_part + step
        row_ids = blk * tile_rows + lax.broadcasted_iota(
            jnp.int32, (tile_rows, _LANES), 0)
        d = jnp.where(row_ids < rows, d, 0.0)

    # Pure VPU accumulation; no XLU / cross-lane work in the inner loop.
    sq_ref[...] += d * d
    abs_ref[...] += jnp.abs(d)


def _reduce_sums(x, y):
    """Single Pallas pass: returns (sum((x-y)^2), sum(|x-y|), n_elements)."""
    n = x.size
    xf = x.reshape(-1)
    yf = y.reshape(-1)

    # Only pad when the element count is not lane-aligned (rare); zeros in
    # both x and y contribute 0 to both sums.
    if n % _LANES != 0:
        pad = _round_up(n, _LANES) - n
        xf = jnp.pad(xf, (0, pad))
        yf = jnp.pad(yf, (0, pad))

    rows = xf.size // _LANES
    x2 = xf.reshape(rows, _LANES)
    y2 = yf.reshape(rows, _LANES)

    # Block row count: full extent for small inputs (always a legal block),
    # otherwise a large (multiple-of-8) tile for HBM-roofline streaming.
    if rows <= _MAX_TILE_ROWS:
        tile_rows = rows
    else:
        tile_rows = _MAX_TILE_ROWS

    num_blocks = pl.cdiv(rows, tile_rows)
    num_parts = _NUM_PARTS
    steps_per_part = pl.cdiv(num_blocks, num_parts)
    needs_mask = (num_parts * steps_per_part * tile_rows) != rows

    kernel = functools.partial(
        _reduce_kernel,
        tile_rows=tile_rows,
        rows=rows,
        steps_per_part=steps_per_part,
        needs_mask=needs_mask,
    )

    def in_idx(c, i):
        # Clamp so out-of-range steps re-read the last valid block (masked to
        # zero contribution inside the kernel).
        return (jnp.minimum(c * steps_per_part + i, num_blocks - 1), 0)

    def out_idx(c, i):
        return (c, 0, 0)

    in_spec = pl.BlockSpec((tile_rows, _LANES), in_idx)
    out_spec = pl.BlockSpec((None, tile_rows, _LANES), out_idx)

    sq_part, abs_part = pl.pallas_call(
        kernel,
        out_shape=(
            jax.ShapeDtypeStruct((num_parts, tile_rows, _LANES), jnp.float32),
            jax.ShapeDtypeStruct((num_parts, tile_rows, _LANES), jnp.float32),
        ),
        grid_spec=pltpu.PrefetchScalarGridSpec(
            num_scalar_prefetch=0,
            grid=(num_parts, steps_per_part),
            in_specs=[in_spec, in_spec],
            out_specs=[out_spec, out_spec],
        ),
        compiler_params=pltpu.CompilerParams(
            dimension_semantics=("parallel", "arbitrary"),
            vmem_limit_bytes=32 * 1024 * 1024,
        ),
    )(x2, y2)

    # Tiny final cross-lane reduction of the per-lane partials (fused by jit).
    sse = jnp.sum(sq_part)
    sae = jnp.sum(abs_part)
    return sse, sae, n


# -----------------------------------------------------------------------------
# Sub-losses. The original repo constructs these via eval(f'{loss}(args)');
# MSE and L1 are the concrete implementations (mean reduction, matching
# F.mse_loss / F.l1_loss). Both expose `from_sums` so Loss.forward can share a
# single reduction pass over (x, y).
# -----------------------------------------------------------------------------
class MSE:
    def __init__(self, args=None):
        pass

    def from_sums(self, sse, sae, n):
        return sse * jnp.float32(1.0 / n)

    def __call__(self, x, y):
        sse, sae, n = _reduce_sums(x, y)
        return self.from_sums(sse, sae, n)


class L1:
    def __init__(self, args=None):
        pass

    def from_sums(self, sse, sae, n):
        return sae * jnp.float32(1.0 / n)

    def __call__(self, x, y):
        sse, sae, n = _reduce_sums(x, y)
        return self.from_sums(sse, sae, n)


class Loss:
    """
    JAX/Pallas port of the PyTorch `Loss` wrapper: weighted sum of sub-losses,
    returned as a dict keyed by loss name plus 'all'.  All sub-losses share a
    single Pallas reduction pass over (x, y), and the whole forward is jitted.
    """

    def __init__(self, args, loss_str):
        self.loss_str = loss_str
        ratios, losses = loss_parse(loss_str)
        self.losses_name = losses
        self.ratios = ratios
        self.losses = []
        for loss in losses:
            loss_fn = eval(f"{loss}(args)")
            self.losses.append(loss_fn)
        self._forward_jit = jax.jit(self._forward_impl)

    def _forward_impl(self, x, y):
        # One HBM read of x and y for all sub-losses.
        sse, sae, n = _reduce_sums(x, y)
        losses = {}
        loss_all = jnp.float32(0.0)
        for i, loss_fn in enumerate(self.losses):
            if hasattr(loss_fn, "from_sums"):
                loss_sub = self.ratios[i] * loss_fn.from_sums(sse, sae, n)
            else:
                # TODO(synk): unknown sub-losses fall back to their own pass.
                loss_sub = self.ratios[i] * loss_fn(x, y)
            losses[self.losses_name[i]] = loss_sub
            loss_all = loss_all + loss_sub
        losses["all"] = loss_all
        return losses

    def forward(self, x, y):
        return self._forward_jit(x, y)

    __call__ = forward


if __name__ == "__main__":
    key = jax.random.PRNGKey(0)
    kx, ky = jax.random.split(key)

    # small NCHW inputs (prediction x, target y)
    x = jax.random.normal(kx, (2, 4, 16, 16), dtype=jnp.float32)
    y = jax.random.normal(ky, (2, 4, 16, 16), dtype=jnp.float32)

    loss_mod = Loss(args=None, loss_str="1*MSE|0.5*L1")
    out = loss_mod(x, y)
    out = jax.tree_util.tree_map(jax.block_until_ready, out)

    # reference check (plain JAX)
    mse_ref = jnp.mean((x - y) ** 2)
    l1_ref = jnp.mean(jnp.abs(x - y))
    all_ref = 1.0 * mse_ref + 0.5 * l1_ref
    assert jnp.allclose(out["MSE"], mse_ref, rtol=1e-5, atol=1e-6)
    assert jnp.allclose(out["L1"], 0.5 * l1_ref, rtol=1e-5, atol=1e-6)
    assert jnp.allclose(out["all"], all_ref, rtol=1e-5, atol=1e-6)

    # lane-unaligned shape: exercises the pad + in-kernel mask path
    xa = jax.random.normal(kx, (2, 3, 7, 5), dtype=jnp.float32)
    ya = jax.random.normal(ky, (2, 3, 7, 5), dtype=jnp.float32)
    out2 = loss_mod(xa, ya)
    out2 = jax.tree_util.tree_map(jax.block_until_ready, out2)
    assert jnp.allclose(out2["MSE"], jnp.mean((xa - ya) ** 2), rtol=1e-5, atol=1e-6)
    assert jnp.allclose(out2["L1"], 0.5 * jnp.mean(jnp.abs(xa - ya)), rtol=1e-5, atol=1e-6)

    print("KERNEL_OK")
</pallas_src>

<mosaic_0001>
module attributes {stable_mosaic.version = 11 : i64} {
  func.func @_reduce_kernel(%arg0: i32, %arg1: i32, %arg2: memref<16x128xf32, #tpu.memory_space<vmem>>, %arg3: memref<16x128xf32, #tpu.memory_space<vmem>>, %arg4: memref<1x16x128xf32, #tpu.memory_space<vmem>>, %arg5: memref<1x16x128xf32, #tpu.memory_space<vmem>>) attributes {dimension_semantics = [#tpu.dimension_semantics<parallel>, #tpu.dimension_semantics<arbitrary>], iteration_bounds = array<i64: 2, 1>, scalar_prefetch = 0 : i64, scratch_operands = 0 : i64, tpu.core_type = #tpu.core_type<tc>, window_params = [{transform_indices = @transform_0, window_bounds = array<i64: 16, 128>}, {transform_indices = @transform_1, window_bounds = array<i64: 16, 128>}, {transform_indices = @transform_2, window_bounds = array<i64: 1, 16, 128>}, {transform_indices = @transform_3, window_bounds = array<i64: 1, 16, 128>}]} {
    %c0_i32 = arith.constant 0 : i32
    %0 = arith.cmpi eq, %arg1, %c0_i32 : i32
    %1 = arith.extui %0 : i1 to i32
    %c0_i32_0 = arith.constant 0 : i32
    %2 = arith.cmpi ne, %1, %c0_i32_0 : i32
    scf.if %2 {
      %cst_17 = arith.constant 0.000000e+00 : f32
      %30 = vector.broadcast %cst_17 : f32 to vector<16x128xf32>
      %c0_18 = arith.constant 0 : index
      %c0_19 = arith.constant 0 : index
      %c0_20 = arith.constant 0 : index
      %31 = vector.load %arg4[%c0_18, %c0_19, %c0_20] : memref<1x16x128xf32, #tpu.memory_space<vmem>>, vector<1x16x128xf32>
      %32 = vector.shape_cast %31 : vector<1x16x128xf32> to vector<16x128xf32>
      %33 = vector.shape_cast %30 : vector<16x128xf32> to vector<1x16x128xf32>
      tpu.vector_store %arg4[%c0_18, %c0_19, %c0_20], %33 {strides = array<i32>} : memref<1x16x128xf32, #tpu.memory_space<vmem>>, vector<1x16x128xf32>,
      %cst_21 = arith.constant 0.000000e+00 : f32
      %34 = vector.broadcast %cst_21 : f32 to vector<16x128xf32>
      %c0_22 = arith.constant 0 : index
      %c0_23 = arith.constant 0 : index
      %c0_24 = arith.constant 0 : index
      %35 = vector.load %arg5[%c0_22, %c0_23, %c0_24] : memref<1x16x128xf32, #tpu.memory_space<vmem>>, vector<1x16x128xf32>
      %36 = vector.shape_cast %35 : vector<1x16x128xf32> to vector<16x128xf32>
      %37 = vector.shape_cast %34 : vector<16x128xf32> to vector<1x16x128xf32>
      tpu.vector_store %arg5[%c0_22, %c0_23, %c0_24], %37 {strides = array<i32>} : memref<1x16x128xf32, #tpu.memory_space<vmem>>, vector<1x16x128xf32>,
    } else {
    }
    %c0 = arith.constant 0 : index
    %c0_1 = arith.constant 0 : index
    %3 = vector.load %arg2[%c0, %c0_1] : memref<16x128xf32, #tpu.memory_space<vmem>>, vector<16x128xf32>
    %c0_2 = arith.constant 0 : index
    %c0_3 = arith.constant 0 : index
    %4 = vector.load %arg3[%c0_2, %c0_3] : memref<16x128xf32, #tpu.memory_space<vmem>>, vector<16x128xf32>
    %5 = arith.subf %3, %4 : vector<16x128xf32>
    %c1_i32 = arith.constant 1 : i32
    %6 = arith.muli %arg0, %c1_i32 : i32
    %7 = arith.addi %6, %arg1 : i32
    %c16_i32 = arith.constant 16 : i32
    %8 = arith.muli %7, %c16_i32 : i32
    %9 = tpu.iota {dimensions = array<i32: 0>} : vector<16x128xi32>
    %10 = vector.broadcast %8 : i32 to vector<16x128xi32>
    %11 = arith.addi %10, %9 : vector<16x128xi32>
    %c16_i32_4 = arith.constant 16 : i32
    %12 = vector.broadcast %c16_i32_4 : i32 to vector<16x128xi32>
    %13 = arith.cmpi slt, %11, %12 : vector<16x128xi32>
    %cst = arith.constant 0.000000e+00 : f32
    %14 = vector.broadcast %cst : f32 to vector<16x128xf32>
    %15 = arith.select %13, %5, %14 : vector<16x128xi1>, vector<16x128xf32>
    %c0_5 = arith.constant 0 : index
    %c0_6 = arith.constant 0 : index
    %c0_7 = arith.constant 0 : index
    %16 = vector.load %arg4[%c0_5, %c0_6, %c0_7] : memref<1x16x128xf32, #tpu.memory_space<vmem>>, vector<1x16x128xf32>
    %17 = vector.shape_cast %16 : vector<1x16x128xf32> to vector<16x128xf32>
    %18 = arith.mulf %15, %15 : vector<16x128xf32>
    %19 = arith.addf %17, %18 : vector<16x128xf32>
    %c0_8 = arith.constant 0 : index
    %c0_9 = arith.constant 0 : index
    %c0_10 = arith.constant 0 : index
    %20 = vector.load %arg4[%c0_8, %c0_9, %c0_10] : memref<1x16x128xf32, #tpu.memory_space<vmem>>, vector<1x16x128xf32>
    %21 = vector.shape_cast %20 : vector<1x16x128xf32> to vector<16x128xf32>
    %22 = vector.shape_cast %19 : vector<16x128xf32> to vector<1x16x128xf32>
    tpu.vector_store %arg4[%c0_8, %c0_9, %c0_10], %22 {strides = array<i32>} : memref<1x16x128xf32, #tpu.memory_space<vmem>>, vector<1x16x128xf32>,
    %c0_11 = arith.constant 0 : index
    %c0_12 = arith.constant 0 : index
    %c0_13 = arith.constant 0 : index
    %23 = vector.load %arg5[%c0_11, %c0_12, %c0_13] : memref<1x16x128xf32, #tpu.memory_space<vmem>>, vector<1x16x128xf32>
    %24 = vector.shape_cast %23 : vector<1x16x128xf32> to vector<16x128xf32>
    %25 = math.absf %15 : vector<16x128xf32>
    %26 = arith.addf %24, %25 : vector<16x128xf32>
    %c0_14 = arith.constant 0 : index
    %c0_15 = arith.constant 0 : index
    %c0_16 = arith.constant 0 : index
    %27 = vector.load %arg5[%c0_14, %c0_15, %c0_16] : memref<1x16x128xf32, #tpu.memory_space<vmem>>, vector<1x16x128xf32>
    %28 = vector.shape_cast %27 : vector<1x16x128xf32> to vector<16x128xf32>
    %29 = vector.shape_cast %26 : vector<16x128xf32> to vector<1x16x128xf32>
    tpu.vector_store %arg5[%c0_14, %c0_15, %c0_16], %29 {strides = array<i32>} : memref<1x16x128xf32, #tpu.memory_space<vmem>>, vector<1x16x128xf32>,
    return
  }
  func.func @transform_0(%arg0: i32, %arg1: i32) -> (i32, i32) {
    %c1_i32 = arith.constant 1 : i32
    %0 = arith.muli %arg0, %c1_i32 : i32
    %1 = arith.addi %0, %arg1 : i32
    %c0_i32 = arith.constant 0 : i32
    %2 = arith.minsi %1, %c0_i32 : i32
    %c0_i32_0 = arith.constant 0 : i32
    %c0_i32_1 = arith.constant 0 : i32
    return %2, %c0_i32_0 : i32, i32
  }
  func.func @transform_1(%arg0: i32, %arg1: i32) -> (i32, i32) {
    %c1_i32 = arith.constant 1 : i32
    %0 = arith.muli %arg0, %c1_i32 : i32
    %1 = arith.addi %0, %arg1 : i32
    %c0_i32 = arith.constant 0 : i32
    %2 = arith.minsi %1, %c0_i32 : i32
    %c0_i32_0 = arith.constant 0 : i32
    %c0_i32_1 = arith.constant 0 : i32
    return %2, %c0_i32_0 : i32, i32
  }
  func.func @transform_2(%arg0: i32, %arg1: i32) -> (i32, i32, i32) {
    %c0_i32 = arith.constant 0 : i32
    %c0_i32_0 = arith.constant 0 : i32
    %c0_i32_1 = arith.constant 0 : i32
    return %arg0, %c0_i32, %c0_i32_0 : i32, i32, i32
  }
  func.func @transform_3(%arg0: i32, %arg1: i32) -> (i32, i32, i32) {
    %c0_i32 = arith.constant 0 : i32
    %c0_i32_0 = arith.constant 0 : i32
    %c0_i32_1 = arith.constant 0 : i32
    return %arg0, %c0_i32, %c0_i32_0 : i32, i32, i32
  }
}

</mosaic_0001>

<bundles_post_ra>
// kernel: _forward_impl.1
= control target key start
LH: loop header
LB: loop body
LE: loop exit
PB: predicated region body
PF: predicated region fallthrough
CT: control target
= control target key end

     0   :  { %s499_s12 = smov 0   ;;  %s501_s13 = smov 0   ;;  %s538_s0 = inlined_call_operand.vmem [shape: f32[16,128], index: 0, kind: input, shape index: {}]   ;;  %s539_s1 = inlined_call_operand.vmem [shape: f32[16,128], index: 1, kind: input, shape index: {}]   ;;  %s540_s2 = inlined_call_operand.vmem [shape: f32[2,16,128], index: 2, kind: output, shape index: {0}]   ;;  %s541_s3 = inlined_call_operand.vmem [shape: f32[2,16,128], index: 3, kind: output, shape index: {1}]  }
   0x1   :  { %s503_s14 = smov 0  }
   0x2 LB: > { %s26_s15 = sadd.s32 1, %s473_s13  ;;  %p416_p0 = scmp.ge.s32.totalorder %s477_s14, 1  ;;  %s477_s14 = sphi %s503_s14, %s14_s14   ;;  %s473_s13 = sphi %s501_s13, %s543_s13   ;;  %s469_s12 = sphi %s499_s12, %s542_s12  }
   0x3   : > { %p28_p1 = scmp.ge.s32.totalorder %s26_s15, 2  ;;  %p188_p2 = scmp.lt.s32.totalorder %s477_s14, 3 }
   0x5   : > { %s545_s15 = smov (%p28_p1, %s26_s15), 0  ;;  %p189_p3 = pnand %p416_p0, %p188_p2 }
   0x6   : > { %p229_p4 = scmp.lt.s32.totalorder (!%p189_p3), %s469_s12, 0  ;;  %s425_s16 = sshll.u32 (!%p189_p3), %s469_s12, 4 }
   0x7   : > { %192 = sbr.rel (%p189_p3) target bundleno = 31 (0x1f), region = 28  ;;  %p252_p5 = scmp.lt.s32.totalorder (!%p189_p3), %s469_s12, 1 }
   0xc   : > { %v278_v0 = vlaneseq  ;;  %s230_s17 = scalar_select %p229_p4, %s469_s12, 0  ;;  %v281_v2 = vstv %s425_s16 }
   0xd   : > { %s549_s12 = smov (!%p252_p5, %s469_s12), 1 }
   0xe   : > { %v279_v1 = vshrl.u32 %v278_v0, 7  ;;  %s417_s18 = sshll.u32 %s230_s17, 1  ;;  %s428_s26 = sshll.u32 %s549_s12, 4 }
   0xf   : > { %p232_p6 = scmp.lt.s32.totalorder %s417_s18, 1  ;;  %s256_s29 = scalar_lea.vmem %s540_s2, %s428_s26 }
  0x10   : > { %v280_v3 = vadd.s32 8, %v279_v1  ;;  %v282_v4 = vadd.s32 %v281_v2, %v279_v1  ;;  %s261_s5 = scalar_lea.vmem %s541_s3, %s428_s26 }
  0x11   : > { %s547_s18 = smov (!%p232_p6, %s417_s18), 1 }
  0x12   : > { %v283_v5 = vadd.s32 %v281_v2, %v280_v3  ;;  %s418_s19 = sshll.u32 %s547_s18, 3  ;;  %vm284_vm0 = vcmp.lt.s32.totalorder %v282_v4, 16 }
  0x13   : > { %s235_s22 = scalar_lea.vmem %s538_s0, %s418_s19  ;;  %s247_s25 = scalar_lea.vmem %s539_s1, %s418_s19 }
  0x14   : > { %v270_v6 = vld [vmem:[%s235_s22] sm:$0xff]  ;;  %v271_v8 = vld [vmem:[%s235_s22 + $0x8] sm:$0xff]  ;;  %vm285_vm1 = vcmp.lt.s32.totalorder %v283_v5, 16 }
  0x15   : > { %v272_v7 = vld [vmem:[%s247_s25] sm:$0xff]  ;;  %v273_v10 = vld [vmem:[%s247_s25 + $0x8] sm:$0xff] }
  0x16   : > { %v274_v9 = vsub.f32 %v270_v6, %v272_v7  ;;  %v275_v11 = vsub.f32 %v271_v8, %v273_v10 }
  0x18   : > { %v286_v12 = vsel %vm284_vm0, %v274_v9, 0.0  ;;  %v287_v14 = vsel %vm285_vm1, %v275_v11, 0.0 }
  0x19   : > { %v290_v13 = vmul.f32 %v286_v12, %v286_v12  ;;  %v298_v15 = vand.u32 2147483647, %v286_v12  ;;  %v291_v16 = vmul.f32 %v287_v14, %v287_v14  ;;  %v299_v17 = vand.u32 2147483647, %v287_v14 }
  0x1b   : > { %294 = vst [vmem:[%s256_s29] sm:$0xff] %v290_v13 }
  0x1c   : > { %295 = vst [vmem:[%s256_s29 + $0x8] sm:$0xff] %v291_v16 }
  0x1d   : > { %302 = vst [vmem:[%s261_s5] sm:$0xff] %v298_v15 }
  0x1e   : > { %303 = vst [vmem:[%s261_s5 + $0x8] sm:$0xff] %v299_v17 }
  0x1f PF: > { %s14_s14 = sadd.s32 1, %s477_s14   ;;  %s542_s12 = smov %s473_s13 }
  0x20   : > { %p11_p7 = scmp.ge.s32.totalorder %s14_s14, 4   ;;  %s543_s13 = smov %s545_s15 }
  0x22   :  { %13 = sbr.rel (!%p11_p7) target bundleno = 2 (0x2), region = 77 }

</bundles_post_ra>
